<compile_context>
chip_gen: v6e
topology: v6e:2x2x1
jax: 0.10.0
libtpu: 0.0.40
codegen_flags: <defaults>
</compile_context>

<pallas_src>
import functools

import numpy as np
import jax
import jax.numpy as jnp
from jax.experimental import pallas as pl
from jax.experimental.pallas import tpu as pltpu


# ----------------------------- Pallas kernel --------------------------------

def _xnor_kernel(x_ref, o_ref, *, inv_n, compute_alpha, center_rowwise):
    # Load in native dtype; upcast in-vreg (free relative to HBM traffic).
    x = x_ref[...].astype(jnp.float32)                       # (TM, K)
    if center_rowwise:
        # 2-D center_weights: mean over dim 1 == row mean over the lane axis.
        x = x - jnp.mean(x, axis=-1, keepdims=True)
    # sign(x) with sign(0) == 0 (matches torch.sign).  2 cmps + 2 selects on the
    # VALU; the kernel is HBM-bound so no copysign bit-trick is needed.
    s = jnp.where(x > 0.0, 1.0, jnp.where(x < 0.0, -1.0, 0.0))
    if compute_alpha:
        # per-row mean absolute value == (1/n) * L1 norm over all trailing dims (XLU)
        alpha = jnp.sum(jnp.abs(x), axis=-1, keepdims=True) * inv_n
        o_ref[...] = (s * alpha).astype(o_ref.dtype)
    else:
        o_ref[...] = s.astype(o_ref.dtype)


# ----------------------------- tiling helpers --------------------------------

def _round_up(v, m):
    return ((v + m - 1) // m) * m


def _vmem_pipeline_budget_bytes():
    """Target total bytes for all pipeline buffers (2x input + 2x output)."""
    try:
        cap = int(pltpu.get_tpu_info().vmem_capacity_bytes)
    except Exception:
        cap = 64 * 1024 * 1024                 # conservative: v7x physical VMEM
    # ~1/4 of physical VMEM, clamped to [12 MiB, 32 MiB]:
    #   v5e / v6e (128 MiB physical) -> 32 MiB total footprint
    #   v7x       ( 64 MiB physical) -> 16 MiB total footprint
    return int(min(32 * 1024 * 1024, max(12 * 1024 * 1024, cap // 4)))


def _pick_row_tile(M, K, itemsize):
    """Pick row tile TM so that 2 in + 2 out buffers of (TM, K) fit the budget.

    Returns None when even the minimal tile cannot fit (huge-fan-in edge case).
    """
    row_align = max(8, 32 // max(itemsize, 1))   # 8 for f32, 16 for bf16/fp16
    budget = _vmem_pipeline_budget_bytes()
    per_row = 4 * K * itemsize                   # 2x input + 2x output, per row
    rows_fit = budget // max(per_row, 1)

    if rows_fit < row_align:
        # Even a minimal (row_align, K) tile blows the budget; allow up to
        # ~48 MiB total (still under v7x's 64 MiB physical) before giving up.
        if row_align * per_row <= 48 * 1024 * 1024:
            return row_align
        return None

    if M <= rows_fit:
        # Whole array fits in one step.  Force >=2 grid steps when possible so the
        # "parallel" row axis can shard across v7x's two TensorCores (costs only
        # one extra ~0.35us grid step on single-TC v5e/v6e).
        if M >= 2 * row_align:
            return min(M, _round_up((M + 1) // 2, row_align))
        return M                                  # tiny weight: single full-dim block

    return max(row_align, (rows_fit // row_align) * row_align)


# ----------------------------- wrapper ---------------------------------------

def xnor_weight_binarize(x, *, compute_alpha=True, center_weights=False):
    """Pallas port of XNORWeightBinarizer.forward (forward pass only)."""
    if compute_alpha and x.ndim not in (2, 3, 4):
        raise ValueError(f"Expected ndims equal with 2 or 4, but found {x.ndim}")

    orig_shape = x.shape
    orig_dtype = x.dtype
    itemsize = jnp.dtype(orig_dtype).itemsize
    center_rowwise = bool(center_weights) and x.ndim == 2

    if center_weights and x.ndim != 2:
        # TODO(synk): dim-1 centering for 3/4-D weights is done as a wrapper op
        # (one extra HBM pass); fusing it needs a strided in-kernel reduce that is
        # not lane-friendly in the flattened (M, K) layout.
        x = x - jnp.mean(x, axis=1, keepdims=True)

    M = int(orig_shape[0])
    K = int(np.prod(orig_shape[1:])) if x.ndim > 1 else 1

    if (not compute_alpha) and (not center_weights):
        # Pure elementwise sign(): free wrapper reshape to a lane-dense slab so
        # stores are unmasked vst even when K % 128 != 0.
        total = int(np.prod(orig_shape))
        for width in (4096, 2048, 1024, 512, 256, 128):
            if total % width == 0:
                M2, K2 = total // width, width
                break
        else:
            M2, K2 = M, K
    else:
        M2, K2 = M, K

    TM = _pick_row_tile(M2, K2, itemsize)
    if TM is None:
        # TODO(synk): huge fan-in (a single minimal row tile exceeds VMEM) would need
        # a K-tiled two-pass kernel; fall back to plain JAX for this edge case.
        xf = x.astype(jnp.float32)
        if center_rowwise:
            xf = xf - jnp.mean(xf, axis=1, keepdims=True)
        out = jnp.sign(xf)
        if compute_alpha:
            axes = tuple(range(1, xf.ndim))
            out = out * (jnp.sum(jnp.abs(xf), axis=axes, keepdims=True) / float(K))
        return out.astype(orig_dtype)

    x2 = x.reshape(M2, K2)                      # contiguous wrapper reshape (free)

    footprint = 4 * TM * K2 * itemsize          # 2x input + 2x output buffers
    vmem_limit = int(min(56 * 1024 * 1024, max(footprint + (4 << 20), 16 << 20)))

    grid = (pl.cdiv(M2, TM),)
    out = pl.pallas_call(
        functools.partial(
            _xnor_kernel,
            inv_n=1.0 / float(K2),
            compute_alpha=bool(compute_alpha),
            center_rowwise=center_rowwise,
        ),
        out_shape=jax.ShapeDtypeStruct((M2, K2), orig_dtype),
        grid_spec=pltpu.PrefetchScalarGridSpec(
            num_scalar_prefetch=0,
            grid=grid,
            in_specs=[pl.BlockSpec((TM, K2), lambda i: (i, 0))],
            out_specs=pl.BlockSpec((TM, K2), lambda i: (i, 0)),
        ),
        compiler_params=pltpu.CompilerParams(
            dimension_semantics=("parallel",),
            vmem_limit_bytes=vmem_limit,
        ),
    )(x2)
    return out.reshape(orig_shape)


# ----------------------------- pure-JAX reference ----------------------------

def xnor_weight_binarize_ref(x, *, compute_alpha=True, center_weights=False):
    xf = x.astype(jnp.float32)
    if center_weights:
        xf = xf - jnp.mean(xf, axis=1, keepdims=True)
    out = jnp.sign(xf)
    if compute_alpha:
        n = float(np.prod(x.shape[1:]))
        axes = tuple(range(1, x.ndim))
        out = out * (jnp.sum(jnp.abs(xf), axis=axes, keepdims=True) / n)
    return out


# ----------------------------- main ------------------------------------------

if __name__ == "__main__":
    key = jax.random.PRNGKey(0)
    k1, k2, k3, k4 = jax.random.split(key, 4)
    w4d = jax.random.normal(k1, (32, 16, 3, 3), jnp.float32)       # conv2d weight
    w3d = jax.random.normal(k2, (16, 8, 24), jnp.float32)          # conv1d weight
    w2d = jax.random.normal(k3, (64, 256), jnp.float32)            # linear weight
    wbf = jax.random.normal(k4, (32, 128), jnp.float32).astype(jnp.bfloat16)

    cases = [
        (w4d, dict(compute_alpha=True, center_weights=False), 1e-5),   # default ctor
        (w3d, dict(compute_alpha=True, center_weights=False), 1e-5),
        (w2d, dict(compute_alpha=True, center_weights=False), 1e-5),
        (w2d, dict(compute_alpha=True, center_weights=True), 1e-5),    # fused 2-D center
        (w4d, dict(compute_alpha=True, center_weights=True), 1e-5),    # wrapper 4-D center
        (w4d, dict(compute_alpha=False, center_weights=False), 1e-5),  # lane-dense sign path
        (wbf, dict(compute_alpha=True, center_weights=False), 2e-2),   # native bf16 I/O
    ]
    for w, kw, tol in cases:
        out = jax.block_until_ready(xnor_weight_binarize(w, **kw))
        assert out.shape == w.shape, (out.shape, w.shape)
        assert out.dtype == w.dtype, (out.dtype, w.dtype)
        ref = xnor_weight_binarize_ref(w, **kw)
        err = float(jnp.max(jnp.abs(out.astype(jnp.float32) - ref)))
        assert err < tol, f"shape={w.shape} kwargs={kw} max abs err {err}"

    print("KERNEL_OK")
</pallas_src>

<mosaic_0001>
module attributes {stable_mosaic.version = 11 : i64} {
  func.func @_xnor_kernel(%arg0: i32, %arg1: memref<16x144xf32, #tpu.memory_space<vmem>>, %arg2: memref<16x144xf32, #tpu.memory_space<vmem>>) attributes {dimension_semantics = [#tpu.dimension_semantics<parallel>], iteration_bounds = array<i64: 2>, scalar_prefetch = 0 : i64, scratch_operands = 0 : i64, tpu.core_type = #tpu.core_type<tc>, window_params = [{transform_indices = @transform_0, window_bounds = array<i64: 16, 144>}, {transform_indices = @transform_1, window_bounds = array<i64: 16, 144>}]} {
    %c0 = arith.constant 0 : index
    %c0_0 = arith.constant 0 : index
    %0 = vector.load %arg1[%c0, %c0_0] : memref<16x144xf32, #tpu.memory_space<vmem>>, vector<16x144xf32>
    %cst = arith.constant 0.000000e+00 : f32
    %1 = vector.broadcast %cst : f32 to vector<16x144xf32>
    %2 = arith.cmpf ogt, %0, %1 : vector<16x144xf32>
    %cst_1 = arith.constant 0.000000e+00 : f32
    %3 = vector.broadcast %cst_1 : f32 to vector<16x144xf32>
    %4 = arith.cmpf olt, %0, %3 : vector<16x144xf32>
    %cst_2 = arith.constant -1.000000e+00 : f32
    %cst_3 = arith.constant 0.000000e+00 : f32
    %5 = vector.broadcast %cst_2 : f32 to vector<16x144xf32>
    %6 = vector.broadcast %cst_3 : f32 to vector<16x144xf32>
    %7 = arith.select %4, %5, %6 : vector<16x144xi1>, vector<16x144xf32>
    %cst_4 = arith.constant 1.000000e+00 : f32
    %8 = vector.broadcast %cst_4 : f32 to vector<16x144xf32>
    %9 = arith.select %2, %8, %7 : vector<16x144xi1>, vector<16x144xf32>
    %10 = math.absf %0 : vector<16x144xf32>
    %cst_5 = arith.constant dense<0.000000e+00> : vector<16xf32>
    %11 = vector.multi_reduction <add>, %10, %cst_5 [1] : vector<16x144xf32> to vector<16xf32>
    %12 = vector.shape_cast %11 : vector<16xf32> to vector<16x1xf32>
    %cst_6 = arith.constant 0.0069444445 : f32
    %13 = vector.broadcast %cst_6 : f32 to vector<16x1xf32>
    %14 = arith.mulf %12, %13 : vector<16x1xf32>
    %15 = vector.broadcast %14 : vector<16x1xf32> to vector<16x144xf32>
    %16 = arith.mulf %9, %15 : vector<16x144xf32>
    %c0_7 = arith.constant 0 : index
    %c0_8 = arith.constant 0 : index
    %17 = vector.load %arg2[%c0_7, %c0_8] : memref<16x144xf32, #tpu.memory_space<vmem>>, vector<16x144xf32>
    tpu.vector_store %arg2[%c0_7, %c0_8], %16 {strides = array<i32>} : memref<16x144xf32, #tpu.memory_space<vmem>>, vector<16x144xf32>,
    return
  }
  func.func @transform_0(%arg0: i32) -> (i32, i32) {
    %c0_i32 = arith.constant 0 : i32
    %c0_i32_0 = arith.constant 0 : i32
    return %arg0, %c0_i32 : i32, i32
  }
  func.func @transform_1(%arg0: i32) -> (i32, i32) {
    %c0_i32 = arith.constant 0 : i32
    %c0_i32_0 = arith.constant 0 : i32
    return %arg0, %c0_i32 : i32, i32
  }
}

</mosaic_0001>

<bundles_post_ra>
// kernel: tpu_custom_call.1
= control target key start
LH: loop header
LB: loop body
LE: loop exit
PB: predicated region body
PF: predicated region fallthrough
CT: control target
= control target key end

     0   :  { %6 = vsyncpa [#allocation3], 0  ;;  %s613_s0 = inlined_call_operand.hbm [shape: f32[32,144], index: 0, kind: input, shape index: {}]   ;;  %s614_s1 = inlined_call_operand.hbm [shape: f32[32,144], index: 1, kind: output, shape index: {}]  }
   0x1   :  { %8 = vsyncpa [#allocation3 + $0x1], 0 }
   0x2   :  { %9 = vsyncpa [#allocation4], 0 }
   0x3   :  { %11 = vsyncpa [#allocation4 + $0x1], 0  ;;  %s451_s6 = smov 0   ;;  %s453_s7 = smov 0  }
   0x4   :  { %s455_s8 = smov 0   ;;  %s457_s9 = smov 0  }
   0x5 LB: > { %s472_s10 = sadd.s32 4294967295, %s432_s9   ;;  %s269_s11 = sadd.s32 4294967294, %s432_s9   ;;  %s432_s9 = sphi %s457_s9, %s629_s9   ;;  %s428_s8 = sphi %s455_s8, %s628_s8   ;;  %s424_s7 = sphi %s453_s7, %s627_s7   ;;  %s420_s6 = sphi %s451_s6, %s626_s6  }
   0x6   : > { %s476_s12 = sadd.s32 1, %s432_s9   ;;  %s24_s13 = sadd.s32 1, %s428_s8 }
   0x7   : > { %s21_s14 = ssub.s32 %s432_s9, %s476_s12  ;;  %p31_p0 = scmp.ne.s32.totalorder %s428_s8, %s424_s7 }
   0x8   : > { %p22_p1 = scmp.eq.s32.totalorder %s21_s14, 0  ;;  %p32_p2 = scmp.eq.s32.totalorder %s432_s9, 0 }
   0x9   : > { %p37_p3 = scmp.ne.s32.totalorder %s424_s7, %s420_s6  ;;  %p38_p4 = scmp.eq.s32.totalorder %s472_s10, 0 }
   0xa   : > { %s488_s15 = scalar_select %p22_p1, %s428_s8, %s24_s13  }
   0xb   : > { %p490_p5 = por %p32_p2, %p31_p0  ;;  %p494_p6 = por %p38_p4, %p37_p3 }
   0xc   : > { %p61_p7 = scmp.eq.s32.totalorder %s472_s10, 1  ;;  %p67_p8 = scmp.eq.s32.totalorder %s269_s11, 1 }
   0xd   : > { %s618_s17 = scalar_select %p494_p6, 1, 0 }
   0xe   : > { %p301_p10 = scmp.lt.s32.totalorder %s432_s9, 2  ;;  %p501_p11 = por %p61_p7, %p31_p0 }
   0xf   : > { %p505_p12 = por %p67_p8, %p37_p3  ;;  %s87_s20 = sand.u32 1, %s428_s8  }
  0x10   : > { %s619_s18 = scalar_select %p501_p11, 1, 0 }
  0x11   : > { %s620_s19 = scalar_select %p505_p12, 1, 0 }
  0x12   : > { %s286_s21 = sshll.u32 %s432_s9, 9  ;;  %s272_s22 = sshll.u32 %s87_s20, 5 }
  0x13   : > { %s514_s25 = scalar_lea.hbm %s613_s0, %s286_s21  ;;  %s91_s26 = scalar_lea.vmem [#allocation2], %s272_s22 }
  0x14   : > { %s99_s27 = sshll.u32 %s91_s26, 4  ;;  %p518_p13 = pnand %p301_p10, %p490_p5  ;;  %s522_s27 = int_to_ptr.vmem [resolvable:$true] %s99_s27 }
  0x15   : > { %s524_s29 = scalar_lea.sflag [#allocation3], %s87_s20  ;;  %s340_s30 = scalar_lea.hbm %s514_s25, 512 }
  0x16   : > { %p341_p0 = scmp.ne.s32.totalorder %s514_s25, %s340_s30  ;;  %p342_p1 = pneg %p518_p13 }
  0x17   : > { %s345_s4 = scalar_lea.hbm %s613_s0, 1024  ;;  %p346_p4 = scmp.lt.s32.totalorder %s514_s25, %s613_s0 }
  0x18   : > { %p343_p2 = pnand %p342_p1, %p341_p0  ;;  %p347_p5 = scmp.lt.s32.totalorder %s345_s4, %s340_s30 }
  0x1a   : > { %p344_p3 = pneg %p343_p2  ;;  %p348_p7 = por %p347_p5, %p346_p4 }
  0x1c   : > { %p349_p8 = pnand %p348_p7, %p344_p3 }
  0x1e   : > { %352 = shalt.err (!%p349_p8)
}
  0x1f   : > { %s353_s13 = scalar_lea.vmem %s522_s27, 512  ;;  %s434_s14 = smov [#allocation2]  }
  0x20   : > { %p354_p10 = scmp.ne.s32.totalorder %s522_s27, %s353_s13  ;;  %s358_s16 = sshll.u32 %s434_s14, 4  ;;  %s359_s16 = int_to_ptr.vmem [resolvable:$false] %s358_s16 }
  0x21   : > { %s360_s20 = scalar_lea.vmem %s359_s16, 1024  ;;  %p361_p2 = scmp.lt.s32.totalorder %s522_s27, %s359_s16 }
  0x22   : > { %p356_p9 = pnand %p354_p10, %p342_p1  ;;  %p362_p12 = scmp.lt.s32.totalorder %s360_s20, %s353_s13 }
  0x24   : > { %p357_p0 = pneg %p356_p9  ;;  %p363_p11 = por %p362_p12, %p361_p2 }
  0x26   : > { %p364_p6 = pnand %p363_p11, %p357_p0 }
  0x28   : > { %367 = shalt.err (!%p364_p6)
}
  0x29   : > { %s435_s21 = smov 256   ;;  %s436_s22 = smov 16  }
  0x2a   : > { %296 = dma.hbm_to_vmem [thread:$0]  (!%p518_p13), %s514_s25, 512, %s522_s27, %s524_s29, %s435_s21, %s435_s21, %s436_s22  }
  0x2b   : > { %p276_p9 = scmp.ge.s32.totalorder %s432_s9, 1  ;;  %p107_p1 = scmp.lt.s32.totalorder %s432_s9, 3 }
  0x2d   : > { %p108_p3 = pnand %p276_p9, %p107_p1 }
  0x2e   : > { %s548_s23 = sand.u32 (!%p108_p3), 1, %s424_s7   ;;  %p622_p6 = scmp.ne.s32.totalorder (!%p108_p3), %s618_s17, 0 }
  0x2f   : > { %111 = sbr.rel (%p108_p3) target bundleno = 219 (0xdb), region = 24  ;;  %s277_s24 = sshll.u32 (!%p108_p3), %s548_s23, 5 }
  0x30   : > { %s114_s26 = scalar_lea.sflag (!%p108_p3), [#allocation3], %s548_s23  ;;  %s117_s30 = scalar_lea.vmem (!%p108_p3), [#allocation2], %s277_s24 }
  0x34   : > { %411 = dma.done.wait (%p622_p6), %s114_s26, 512  }
  0x35   : > { %413 = vsyncadd (%p622_p6), %s114_s26, 4294966784  ;;  %v138_v0 = vld [vmem:[%s117_s30] sm:$0xff]  ;;  %v139_v1 = vld [vmem:[%s117_s30 + $0x8] sm:$0xff]  ;;  %vm162_vm0 = vcmask 130048   ;;  %v437_v12 = vmov 0.0   ;;  %s135_s17 = scalar_lea.vmem [#allocation5], %s277_s24 }
  0x36   : > { %v140_v2 = vld [vmem:[%s117_s30 + $0x10] sm:$0xff]  ;;  %v158_v3 = vand.u32 2147483647, %v138_v0  ;;  %v159_v4 = vand.u32 2147483647, %v139_v1  ;;  %v141_v5 = vld [vmem:[%s117_s30 + $0x18] sm:$0xff] }
  0x37   : > { %v160_v6 = vand.u32 2147483647, %v140_v2  ;;  %v161_v7 = vand.u32 2147483647, %v141_v5  ;;  %vm147_vm1 = vcmp.lt.f32.partialorder %v139_v1, 0.0  ;;  %vm146_vm2 = vcmp.lt.f32.partialorder %v138_v0, 0.0 }
  0x38   : > { %v163_v8 = vsel %vm162_vm0, %v159_v4, 0.0  ;;  %vm143_vm3 = vcmp.gt.f32.partialorder %v139_v1, 0.0  ;;  %v151_v13 = vsel %vm147_vm1, -1.0, %v437_v12  ;;  %vm142_vm4 = vcmp.gt.f32.partialorder %v138_v0, 0.0  ;;  %s196_s25 = sshll.u32 %s135_s17, 4  ;;  %s288_s27 = sshll.u32 %s472_s10, 9  ;;  %s563_s25 = int_to_ptr.vmem [resolvable:$true] %s196_s25 }
  0x39   : > { %v164_v9 = vadd.f32 %v163_v8, %v158_v3  ;;  %v167_v10 = vsel %vm162_vm0, %v161_v7, 0.0  ;;  %v150_v14 = vsel %vm146_vm2, -1.0, %v437_v12  ;;  %vm148_vm5 = vcmp.lt.f32.partialorder %v140_v2, 0.0  ;;  %s569_s2 = scalar_lea.hbm %s614_s1, %s288_s27  ;;  %s182_s10 = scalar_lea.sflag [#allocation4], %s548_s23 }
  0x3a   : > { %v168_v11 = vadd.f32 %v167_v10, %v160_v6  ;;  %vm149_vm6 = vcmp.lt.f32.partialorder %v141_v5, 0.0  ;;  %v155_v15 = vsel %vm143_vm3, 1.0, %v151_v13  ;;  %v154_v17 = vsel %vm142_vm4, 1.0, %v150_v14  ;;  %s368_s3 = scalar_lea.vmem %s563_s25, 512  ;;  %p623_p12 = scmp.ne.s32.totalorder %s619_s18, 0 }
  0x3b   : > { %165 = vadd.xlane.f32.xlu0 %v164_v9  ;;  %vm144_vm7 = vcmp.gt.f32.partialorder %v140_v2, 0.0  ;;  %vm145_vm8 = vcmp.gt.f32.partialorder %v141_v5, 0.0  ;;  %v152_v19 = vsel %vm148_vm5, -1.0, %v437_v12  ;;  %v153_v20 = vsel %vm149_vm6, -1.0, %v437_v12  ;;  %p369_p11 = scmp.ne.s32.totalorder %s563_s25, %s368_s3  ;;  %s438_s4 = smov [#allocation5]  }
  0x3c   : > { %v156_v23 = vsel %vm144_vm7, 1.0, %v152_v19  ;;  %v157_v24 = vsel %vm145_vm8, 1.0, %v153_v20  ;;  %s372_s5 = sshll.u32 %s438_s4, 4  ;;  %s373_s5 = int_to_ptr.vmem [resolvable:$false] %s372_s5 }
  0x3d   : > { %p370_p13 = pnand %p369_p11, %p623_p12  ;;  %s374_s11 = scalar_lea.vmem %s373_s5, 1024 }
  0x3e   : > { %p375_p5 = scmp.lt.s32.totalorder %s563_s25, %s373_s5  ;;  %p376_p7 = scmp.lt.s32.totalorder %s374_s11, %s368_s3 }
  0x3f   : > { %169 = vadd.xlane.f32.xlu0 %v168_v11  ;;  %p371_p4 = pneg %p370_p13 }
  0x40   : > { %p377_p8 = por %p376_p7, %p375_p5 }
  0x42   : > { %p378_p10 = pnand %p377_p8, %p371_p4 }
  0xc4   : > { %v166_v16 = vpop.xlane.xlu0 %165 }
  0xc5   : > { %v171_v18 = vmul.f32 0.0069444445, %v166_v16 }
  0xc7   : > { %v173_v21 = vmul.f32 %v171_v18, %v154_v17  ;;  %v174_v22 = vmul.f32 %v171_v18, %v155_v15 }
  0xc8   : > { %v170_v25 = vpop.xlane.xlu0 %169 }
  0xc9   : > { %177 = vst [vmem:[%s135_s17] sm:$0xff] %v173_v21  ;;  %178 = vst.msk [vmem:[%s135_s17 + $0x8] sm:$0xff] %vm162_vm0, %v174_v22  ;;  %v172_v26 = vmul.f32 0.0069444445, %v170_v25 }
  0xcb   : > { %v175_v27 = vmul.f32 %v172_v26, %v156_v23  ;;  %v176_v28 = vmul.f32 %v172_v26, %v157_v24 }
  0xcd   : > { %179 = vst [vmem:[%s135_s17 + $0x10] sm:$0xff] %v175_v27  ;;  %180 = vst.msk [vmem:[%s135_s17 + $0x18] sm:$0xff] %vm162_vm0, %v176_v28 }
  0xce   : > { %381 = shalt.err (!%p378_p10)
}
  0xcf   : > { %s382_s13 = scalar_lea.hbm %s569_s2, 512  ;;  %s386_s20 = scalar_lea.hbm %s614_s1, 1024 }
  0xd0   : > { %p383_p0 = scmp.ne.s32.totalorder %s569_s2, %s382_s13  ;;  %p387_p1 = scmp.lt.s32.totalorder %s569_s2, %s614_s1 }
  0xd1   : > { %p388_p3 = scmp.lt.s32.totalorder %s386_s20, %s382_s13 }
  0xd2   : > { %p384_p2 = pnand %p383_p0, %p623_p12 }
  0xd3   : > { %p389_p6 = por %p388_p3, %p387_p1 }
  0xd4   : > { %p385_p9 = pneg %p384_p2 }
  0xd6   : > { %p390_p11 = pnand %p389_p6, %p385_p9 }
  0xd8   : > { %393 = shalt.err (!%p390_p11)
}
  0xd9   : > { %s439_s24 = smov 256   ;;  %s440_s26 = smov 16  }
  0xda   : > { %291 = dma.vmem_to_hbm [thread:$0]  (%p623_p12), %s563_s25, 512, %s569_s2, %s182_s10, %s439_s24, %s439_s24, %s440_s26  }
  0xdb PF: > { %s211_s30 = sand.u32 1, %s420_s6   ;;  %p624_p13 = scmp.ne.s32.totalorder %s620_s19, 0 }
  0xdc   : > { %p625_p4 = scmp.ge.s32.totalorder %s432_s9, 2  ;;  %s212_s17 = scalar_lea.sflag [#allocation4], %s211_s30 }
  0xde   : > { %p298_p5 = pnand %p625_p4, %p624_p13 }
  0xe0   : > { %p299_p7 = pneg %p298_p5 }
  0xe2   : > { %415 = dma.done.wait (%p299_p7), %s212_s17, 512  }
  0xe3   : > { %417 = vsyncadd (%p299_p7), %s212_s17, 4294966784  ;;  %p14_p8 = scmp.ge.s32.totalorder %s476_s12, 4   ;;  %s626_s6 = smov %s424_s7 }
  0xe4   : > { %s627_s7 = smov %s428_s8  ;;  %s628_s8 = smov %s488_s15 }
  0xe5   : > { %s629_s9 = smov %s476_s12  ;;  %16 = sbr.rel (!%p14_p8) target bundleno = 5 (0x5), region = 69 }
  0xea   :  { %217 = vsyncpa [#allocation3], 1 }
  0xeb   :  { %219 = vsyncpa [#allocation3 + $0x1], 1 }
  0xec   :  { %220 = vsyncpa [#allocation4], 1 }
  0xed   :  { %222 = vsyncpa [#allocation4 + $0x1], 1 }

</bundles_post_ra>
